<compile_context>
chip_gen: v6e
topology: v6e:2x2x1
jax: 0.10.0
libtpu: 0.0.40
codegen_flags: <defaults>
</compile_context>

<pallas_src>
import functools

import jax
import jax.numpy as jnp
from jax.experimental import pallas as pl
from jax.experimental.pallas import tpu as pltpu


def _attn_kernel(g_ref, x_ref, wgT_ref, wxT_ref, c_ref, shp_ref, o_ref, *, tm, hw):
    # g_ref: (F_g, tm), x_ref/o_ref: (F_l, tm) -- pixels on the 128-lane axis.
    # wgT_ref: (F_int, F_g), wxT_ref: (F_int, F_l)   (BN scale pre-folded, act dtype)
    # c_ref: (F_int, 2) f32  -- col 0: wpsi (BN scale folded), col 1: shift_g + shift_x
    # shp_ref: (1, 1) f32 in SMEM -- psi shift scalar
    x_tile = x_ref[...]

    g1 = jnp.dot(wgT_ref[...], g_ref[...], preferred_element_type=jnp.float32)
    x1 = jnp.dot(wxT_ref[...], x_tile, preferred_element_type=jnp.float32)
    h = jnp.maximum(g1 + x1 + c_ref[:, 1:2], 0.0)                        # (F_int, tm)

    # psi conv has a single output channel: VPU multiply + cross-sublane reduce.
    p = jnp.sum(h * c_ref[:, 0:1], axis=0, keepdims=True) + shp_ref[0, 0]  # (1, tm)
    psi = pl.reciprocal(1.0 + jnp.exp(-p), approx=True)                  # sigmoid (EUP)

    out = x_tile * psi.astype(x_tile.dtype)                              # broadcast over F_l

    rem = hw % tm
    if rem:
        # Ragged last pixel tile: zero the padded lanes so no garbage/NaN ever
        # reaches the (dropped) OOB writeback region.
        lanes = jax.lax.broadcasted_iota(jnp.int32, (1, tm), 1)
        valid = jnp.where(pl.program_id(1) == pl.num_programs(1) - 1, rem, tm)
        out = jnp.where(lanes < valid, out, 0.0)

    o_ref[...] = out.astype(o_ref.dtype)


def _fold_bn(gamma, beta, mean, var, conv_bias, eps=1e-5):
    scale = gamma / jnp.sqrt(var + eps)
    shift = beta + scale * (conv_bias - mean)
    return scale, shift


def _vmem_capacity_bytes():
    try:
        return int(pltpu.get_tpu_info().vmem_capacity_bytes)
    except Exception:
        return 64 * 2**20  # conservative: v7x per-TensorCore VMEM


def _step_bytes(tm, F_g, F_l, F_int, act_itemsize):
    """Approximate per-step VMEM footprint (pipelined blocks + consts + temporaries)."""
    # double-buffered pipelined activation blocks: g, x, out
    blocks = 2 * tm * (F_g + 2 * F_l) * act_itemsize
    # small constants (wgT, wxT in act dtype; (F_int,2) + scalar in f32), x2 for buffering
    consts = 2 * (F_int * (F_g + F_l) * act_itemsize + F_int * 2 * 4 + 4)
    # f32 in-kernel temporaries: g1, x1, h, h*wpsi (each (F_int, tm)) + psi/p rows + product
    interm = (4 * F_int + F_l + 2) * tm * 4
    return blocks + consts + interm


def _pick_tm(HW, N, F_g, F_l, F_int, act_itemsize, vmem_budget, max_tm=2048):
    """Largest multiple-of-128 pixel tile that fits the VMEM budget and keeps
    enough grid steps for megacore / pipeline depth."""
    hw128 = ((HW + 127) // 128) * 128
    cap = min(max_tm, hw128)
    # keep roughly >= 8 grid steps so both v7x TensorCores get work
    need_tiles = -(-8 // max(N, 1))  # ceil(8 / N)
    mega_cap = max(128, (hw128 // need_tiles) // 128 * 128)
    cap = min(cap, mega_cap)
    tm = max(128, cap)
    while tm > 128 and _step_bytes(tm, F_g, F_l, F_int, act_itemsize) > vmem_budget:
        tm -= 128
    return tm


@functools.partial(jax.jit, static_argnames=("tm",))
def attention_block(g, x, params, *, tm=None):
    """g: (N, F_g, H, W), x: (N, F_l, H, W)  ->  (N, F_l, H, W)."""
    N, F_g, H, W = g.shape
    _, F_l, _, _ = x.shape
    F_int = params["wg"].shape[1]
    HW = H * W

    act_dt = x.dtype
    act_itemsize = jnp.dtype(act_dt).itemsize

    # NCHW -> (N, C, H*W): a pure reshape, no HBM transpose / pad round-trips.
    g3 = g.reshape(N, F_g, HW)
    x3 = x.reshape(N, F_l, HW)

    vmem_budget = int(0.8 * _vmem_capacity_bytes())
    if tm is None:
        tm = _pick_tm(HW, N, F_g, F_l, F_int, act_itemsize, vmem_budget)
    else:
        assert tm % 128 == 0, "tm must be a multiple of 128 lanes"
    step_bytes = _step_bytes(tm, F_g, F_l, F_int, act_itemsize)
    vmem_limit = int(min(vmem_budget, max(2 * step_bytes, 32 * 2**20)))

    # Fold BN (inference form) into conv weights / per-channel shifts.
    sg, shg = _fold_bn(params["bn_g_gamma"], params["bn_g_beta"],
                       params["bn_g_mean"], params["bn_g_var"], params["bg"])
    sx, shx = _fold_bn(params["bn_x_gamma"], params["bn_x_beta"],
                       params["bn_x_mean"], params["bn_x_var"], params["bx"])
    sp, shp_val = _fold_bn(params["bn_p_gamma"], params["bn_p_beta"],
                           params["bn_p_mean"], params["bn_p_var"], params["bpsi"])

    # MXU weights follow the activation dtype (native bf16 path when x is bf16).
    wgT = (params["wg"] * sg[None, :]).T.astype(act_dt)            # (F_int, F_g)
    wxT = (params["wx"] * sx[None, :]).T.astype(act_dt)            # (F_int, F_l)
    # Packed f32 constants: col 0 = psi weights (scale folded), col 1 = combined shift.
    consts = jnp.concatenate(
        [(params["wpsi"] * sp).reshape(F_int, 1),
         (shg + shx).reshape(F_int, 1)], axis=1).astype(jnp.float32)   # (F_int, 2)
    shp = shp_val.reshape(1, 1).astype(jnp.float32)                 # SMEM scalar

    grid = (N, pl.cdiv(HW, tm))
    kernel = functools.partial(_attn_kernel, tm=tm, hw=HW)

    out3 = pl.pallas_call(
        kernel,
        out_shape=jax.ShapeDtypeStruct((N, F_l, HW), act_dt),
        grid_spec=pltpu.PrefetchScalarGridSpec(
            num_scalar_prefetch=0,
            grid=grid,
            in_specs=[
                pl.BlockSpec((None, F_g, tm), lambda n, p: (n, 0, p)),   # g tile
                pl.BlockSpec((None, F_l, tm), lambda n, p: (n, 0, p)),   # x tile
                pl.BlockSpec((F_int, F_g), lambda n, p: (0, 0)),         # Wg^T
                pl.BlockSpec((F_int, F_l), lambda n, p: (0, 0)),         # Wx^T
                pl.BlockSpec((F_int, 2), lambda n, p: (0, 0)),           # [wpsi | shift]
                pl.BlockSpec(memory_space=pltpu.MemorySpace.SMEM),       # psi shift scalar
            ],
            out_specs=pl.BlockSpec((None, F_l, tm), lambda n, p: (n, 0, p)),
        ),
        compiler_params=pltpu.CompilerParams(
            dimension_semantics=("parallel", "parallel"),
            vmem_limit_bytes=vmem_limit),
    )(g3, x3, wgT, wxT, consts, shp)

    return out3.reshape(N, F_l, H, W)


def _reference(g, x, params, eps=1e-5):
    """Pure-JAX reference of the PyTorch forward (BN in inference mode)."""
    def conv1x1(t, w, b):  # t: NCHW, w: (Cin, Cout)
        y = jnp.einsum("nchw,cd->ndhw", t, w)
        return y + b[None, :, None, None]

    def bn(t, gamma, beta, mean, var):
        return (t - mean[None, :, None, None]) / jnp.sqrt(var + eps)[None, :, None, None] \
               * gamma[None, :, None, None] + beta[None, :, None, None]

    g1 = bn(conv1x1(g, params["wg"], params["bg"]),
            params["bn_g_gamma"], params["bn_g_beta"],
            params["bn_g_mean"], params["bn_g_var"])
    x1 = bn(conv1x1(x, params["wx"], params["bx"]),
            params["bn_x_gamma"], params["bn_x_beta"],
            params["bn_x_mean"], params["bn_x_var"])
    h = jnp.maximum(g1 + x1, 0.0)
    p = bn(conv1x1(h, params["wpsi"], params["bpsi"]),
           params["bn_p_gamma"], params["bn_p_beta"],
           params["bn_p_mean"], params["bn_p_var"])
    psi = jax.nn.sigmoid(p)
    return x * psi


def init_params(key, F_g, F_l, F_int):
    ks = jax.random.split(key, 12)
    f32 = jnp.float32
    return {
        # conv weights stored as (Cin, Cout) for the per-pixel matmul
        "wg":   jax.random.normal(ks[0], (F_g, F_int), f32) * 0.2,
        "bg":   jax.random.normal(ks[1], (F_int,), f32) * 0.1,
        "wx":   jax.random.normal(ks[2], (F_l, F_int), f32) * 0.2,
        "bx":   jax.random.normal(ks[3], (F_int,), f32) * 0.1,
        "wpsi": jax.random.normal(ks[4], (F_int, 1), f32) * 0.2,
        "bpsi": jax.random.normal(ks[5], (1,), f32) * 0.1,
        # BatchNorm2d params (inference / running stats)
        "bn_g_gamma": 1.0 + 0.1 * jax.random.normal(ks[6], (F_int,), f32),
        "bn_g_beta":  0.1 * jax.random.normal(ks[7], (F_int,), f32),
        "bn_g_mean":  jnp.zeros((F_int,), f32),
        "bn_g_var":   jnp.ones((F_int,), f32),
        "bn_x_gamma": 1.0 + 0.1 * jax.random.normal(ks[8], (F_int,), f32),
        "bn_x_beta":  0.1 * jax.random.normal(ks[9], (F_int,), f32),
        "bn_x_mean":  jnp.zeros((F_int,), f32),
        "bn_x_var":   jnp.ones((F_int,), f32),
        "bn_p_gamma": 1.0 + 0.1 * jax.random.normal(ks[10], (1,), f32),
        "bn_p_beta":  0.1 * jax.random.normal(ks[11], (1,), f32),
        "bn_p_mean":  jnp.zeros((1,), f32),
        "bn_p_var":   jnp.ones((1,), f32),
    }


if __name__ == "__main__":
    # Small shapes consistent with the module: g (N, F_g, H, W), x (N, F_l, H, W)
    N, F_g, F_l, F_int, H, W = 2, 4, 4, 8, 16, 16
    key = jax.random.PRNGKey(0)
    kg, kx, kp = jax.random.split(key, 3)

    g = jax.random.normal(kg, (N, F_g, H, W), jnp.float32)
    x = jax.random.normal(kx, (N, F_l, H, W), jnp.float32)
    params = init_params(kp, F_g, F_l, F_int)

    out = jax.block_until_ready(attention_block(g, x, params))
    ref = _reference(g, x, params)
    assert out.shape == x.shape
    # approx reciprocal in the sigmoid -> slightly loosened tolerance
    assert jnp.allclose(out, ref, atol=1e-2, rtol=1e-2), "mismatch vs reference (f32)"

    # Ragged pixel tile (H*W not a multiple of 128): exercises the in-kernel tail mask,
    # no wrapper pad/slice HBM passes.
    H2, W2 = 10, 10
    g2 = jax.random.normal(kg, (N, F_g, H2, W2), jnp.float32)
    x2 = jax.random.normal(kx, (N, F_l, H2, W2), jnp.float32)
    out2 = jax.block_until_ready(attention_block(g2, x2, params))
    ref2 = _reference(g2, x2, params)
    assert jnp.allclose(out2, ref2, atol=1e-2, rtol=1e-2), "mismatch (ragged tile path)"

    # bf16 I/O path: weights follow the activation dtype, f32 accumulation on the MXU.
    gb = g.astype(jnp.bfloat16)
    xb = x.astype(jnp.bfloat16)
    outb = jax.block_until_ready(attention_block(gb, xb, params))
    refb = _reference(gb.astype(jnp.float32), xb.astype(jnp.float32), params)
    assert outb.dtype == jnp.bfloat16
    assert jnp.allclose(outb.astype(jnp.float32), refb, atol=6e-2, rtol=6e-2), "mismatch (bf16)"

    print("KERNEL_OK")
</pallas_src>

<mosaic_0001>
module attributes {stable_mosaic.version = 11 : i64} {
  func.func @_attn_kernel(%arg0: i32, %arg1: i32, %arg2: memref<1x4x128xf32, #tpu.memory_space<vmem>>, %arg3: memref<1x4x128xf32, #tpu.memory_space<vmem>>, %arg4: memref<8x4xf32, #tpu.memory_space<vmem>>, %arg5: memref<8x4xf32, #tpu.memory_space<vmem>>, %arg6: memref<8x2xf32, #tpu.memory_space<vmem>>, %arg7: memref<1x1xf32, #tpu.memory_space<smem>>, %arg8: memref<1x4x128xf32, #tpu.memory_space<vmem>>) attributes {dimension_semantics = [#tpu.dimension_semantics<parallel>, #tpu.dimension_semantics<parallel>], iteration_bounds = array<i64: 2, 2>, scalar_prefetch = 0 : i64, scratch_operands = 0 : i64, tpu.core_type = #tpu.core_type<tc>, window_params = [{transform_indices = @transform_0, window_bounds = array<i64: 1, 4, 128>}, {transform_indices = @transform_1, window_bounds = array<i64: 1, 4, 128>}, {pipeline_mode = #tpu.pipeline_mode<synchronous>, transform_indices = @transform_2, window_bounds = array<i64: 8, 4>}, {pipeline_mode = #tpu.pipeline_mode<synchronous>, transform_indices = @transform_3, window_bounds = array<i64: 8, 4>}, {pipeline_mode = #tpu.pipeline_mode<synchronous>, transform_indices = @transform_4, window_bounds = array<i64: 8, 2>}, {transform_indices = @transform_5, window_bounds = array<i64: 1, 1>}, {transform_indices = @transform_6, window_bounds = array<i64: 1, 4, 128>}]} {
    %c0 = arith.constant 0 : index
    %c0_0 = arith.constant 0 : index
    %c0_1 = arith.constant 0 : index
    %0 = vector.load %arg3[%c0, %c0_0, %c0_1] : memref<1x4x128xf32, #tpu.memory_space<vmem>>, vector<1x4x128xf32>
    %1 = vector.shape_cast %0 : vector<1x4x128xf32> to vector<4x128xf32>
    %c0_2 = arith.constant 0 : index
    %c0_3 = arith.constant 0 : index
    %2 = vector.load %arg4[%c0_2, %c0_3] : memref<8x4xf32, #tpu.memory_space<vmem>>, vector<8x4xf32>
    %c0_4 = arith.constant 0 : index
    %c0_5 = arith.constant 0 : index
    %c0_6 = arith.constant 0 : index
    %3 = vector.load %arg2[%c0_4, %c0_5, %c0_6] : memref<1x4x128xf32, #tpu.memory_space<vmem>>, vector<1x4x128xf32>
    %4 = vector.shape_cast %3 : vector<1x4x128xf32> to vector<4x128xf32>
    %cst = arith.constant dense<0.000000e+00> : vector<8x128xf32>
    %5 = tpu.matmul %2, %4, %cst {dimension_numbers = #tpu.dot_dimension_numbers<[1], [0], [0], [1], [0, 0, 1, 1], [], []>} : vector<8x4xf32>, vector<4x128xf32>, vector<8x128xf32> -> vector<8x128xf32>
    %c0_7 = arith.constant 0 : index
    %c0_8 = arith.constant 0 : index
    %6 = vector.load %arg5[%c0_7, %c0_8] : memref<8x4xf32, #tpu.memory_space<vmem>>, vector<8x4xf32>
    %cst_9 = arith.constant dense<0.000000e+00> : vector<8x128xf32>
    %7 = tpu.matmul %6, %1, %cst_9 {dimension_numbers = #tpu.dot_dimension_numbers<[1], [0], [0], [1], [0, 0, 1, 1], [], []>} : vector<8x4xf32>, vector<4x128xf32>, vector<8x128xf32> -> vector<8x128xf32>
    %8 = arith.addf %5, %7 : vector<8x128xf32>
    %c0_10 = arith.constant 0 : index
    %c1 = arith.constant 1 : index
    %9 = vector.load %arg6[%c0_10, %c1] : memref<8x2xf32, #tpu.memory_space<vmem>>, vector<8x1xf32>
    %10 = vector.broadcast %9 : vector<8x1xf32> to vector<8x128xf32>
    %11 = arith.addf %8, %10 : vector<8x128xf32>
    %cst_11 = arith.constant 0.000000e+00 : f32
    %12 = vector.broadcast %cst_11 : f32 to vector<8x128xf32>
    %13 = arith.maximumf %11, %12 : vector<8x128xf32>
    %c0_12 = arith.constant 0 : index
    %c0_13 = arith.constant 0 : index
    %14 = vector.load %arg6[%c0_12, %c0_13] : memref<8x2xf32, #tpu.memory_space<vmem>>, vector<8x1xf32>
    %15 = vector.broadcast %14 : vector<8x1xf32> to vector<8x128xf32>
    %16 = arith.mulf %13, %15 : vector<8x128xf32>
    %cst_14 = arith.constant dense<0.000000e+00> : vector<128xf32>
    %17 = vector.multi_reduction <add>, %16, %cst_14 [0] : vector<8x128xf32> to vector<128xf32>
    %18 = vector.shape_cast %17 : vector<128xf32> to vector<1x128xf32>
    %c0_15 = arith.constant 0 : index
    %c0_16 = arith.constant 0 : index
    %19 = memref.load %arg7[%c0_15, %c0_16] : memref<1x1xf32, #tpu.memory_space<smem>>
    %20 = vector.broadcast %19 : f32 to vector<1x128xf32>
    %21 = arith.addf %18, %20 : vector<1x128xf32>
    %cst_17 = arith.constant 0.000000e+00 : f32
    %22 = vector.broadcast %cst_17 : f32 to vector<1x128xf32>
    %23 = arith.subf %22, %21 : vector<1x128xf32>
    %24 = math.exp %23 : vector<1x128xf32>
    %cst_18 = arith.constant 1.000000e+00 : f32
    %25 = vector.broadcast %cst_18 : f32 to vector<1x128xf32>
    %26 = arith.addf %25, %24 : vector<1x128xf32>
    %27 = tpu.reciprocal %26 {approx = true} : vector<1x128xf32> -> vector<1x128xf32>
    %28 = vector.broadcast %27 : vector<1x128xf32> to vector<4x128xf32>
    %29 = arith.mulf %1, %28 : vector<4x128xf32>
    %c0_19 = arith.constant 0 : index
    %c0_20 = arith.constant 0 : index
    %c0_21 = arith.constant 0 : index
    %30 = vector.load %arg8[%c0_19, %c0_20, %c0_21] : memref<1x4x128xf32, #tpu.memory_space<vmem>>, vector<1x4x128xf32>
    %31 = vector.shape_cast %30 : vector<1x4x128xf32> to vector<4x128xf32>
    %32 = vector.shape_cast %29 : vector<4x128xf32> to vector<1x4x128xf32>
    tpu.vector_store %arg8[%c0_19, %c0_20, %c0_21], %32 {strides = array<i32>} : memref<1x4x128xf32, #tpu.memory_space<vmem>>, vector<1x4x128xf32>,
    return
  }
  func.func @transform_0(%arg0: i32, %arg1: i32) -> (i32, i32, i32) {
    %c0_i32 = arith.constant 0 : i32
    %c0_i32_0 = arith.constant 0 : i32
    return %arg0, %c0_i32, %arg1 : i32, i32, i32
  }
  func.func @transform_1(%arg0: i32, %arg1: i32) -> (i32, i32, i32) {
    %c0_i32 = arith.constant 0 : i32
    %c0_i32_0 = arith.constant 0 : i32
    return %arg0, %c0_i32, %arg1 : i32, i32, i32
  }
  func.func @transform_2(%arg0: i32, %arg1: i32) -> (i32, i32) {
    %c0_i32 = arith.constant 0 : i32
    %c0_i32_0 = arith.constant 0 : i32
    %c0_i32_1 = arith.constant 0 : i32
    return %c0_i32, %c0_i32_0 : i32, i32
  }
  func.func @transform_3(%arg0: i32, %arg1: i32) -> (i32, i32) {
    %c0_i32 = arith.constant 0 : i32
    %c0_i32_0 = arith.constant 0 : i32
    %c0_i32_1 = arith.constant 0 : i32
    return %c0_i32, %c0_i32_0 : i32, i32
  }
  func.func @transform_4(%arg0: i32, %arg1: i32) -> (i32, i32) {
    %c0_i32 = arith.constant 0 : i32
    %c0_i32_0 = arith.constant 0 : i32
    %c0_i32_1 = arith.constant 0 : i32
    return %c0_i32, %c0_i32_0 : i32, i32
  }
  func.func @transform_5(%arg0: i32, %arg1: i32) -> (i32, i32) {
    %c0_i32 = arith.constant 0 : i32
    %c0_i32_0 = arith.constant 0 : i32
    %c0_i32_1 = arith.constant 0 : i32
    return %c0_i32, %c0_i32_0 : i32, i32
  }
  func.func @transform_6(%arg0: i32, %arg1: i32) -> (i32, i32, i32) {
    %c0_i32 = arith.constant 0 : i32
    %c0_i32_0 = arith.constant 0 : i32
    return %arg0, %c0_i32, %arg1 : i32, i32, i32
  }
}

</mosaic_0001>

<bundles_post_ra>
// kernel: attention_block.1
= control target key start
LH: loop header
LB: loop body
LE: loop exit
PB: predicated region body
PF: predicated region fallthrough
CT: control target
= control target key end

     0   :  { %s769_s23 = smov 0   ;;  %s771_s24 = smov 0   ;;  %s837_s0 = inlined_call_operand.vmem [shape: f32[2,4,256], index: 0, kind: input, shape index: {}]   ;;  %s838_s1 = inlined_call_operand.vmem [shape: f32[2,4,256], index: 1, kind: input, shape index: {}]   ;;  %s839_s2 = inlined_call_operand.vmem [shape: f32[8,4], index: 2, kind: input, shape index: {}]   ;;  %s840_s3 = inlined_call_operand.vmem [shape: f32[8,4], index: 3, kind: input, shape index: {}]   ;;  %s841_s4 = inlined_call_operand.vmem [shape: f32[8,2], index: 4, kind: input, shape index: {}]   ;;  %s842_s5 = inlined_call_operand.<no memory space> [shape: f32[1,1], index: 5, kind: input, shape index: {}]   ;;  %s843_s6 = inlined_call_operand.vmem [shape: f32[2,4,256], index: 6, kind: output, shape index: {}]  }
   0x1   :  { %11 = sst [smem:[#allocation2]] %s842_s5  ;;  %s773_s25 = smov 0  }
   0x2   :  { %s775_s26 = smov 0   ;;  %s777_s27 = smov 0  }
   0x3 LB: > { %s26_s5 = sadd.s32 1, %s717_s25  ;;  %s29_s28 = sadd.s32 1, %s721_s26  ;;  %s725_s27 = sphi %s777_s27, %s17_s27   ;;  %s721_s26 = sphi %s775_s26, %s847_s26   ;;  %s717_s25 = sphi %s773_s25, %s846_s25   ;;  %s713_s24 = sphi %s771_s24, %s845_s24   ;;  %s709_s23 = sphi %s769_s23, %s844_s23  }
   0x4   : > { %p27_p0 = scmp.ge.s32.totalorder %s26_s5, 2  ;;  %p610_p1 = scmp.ge.s32.totalorder %s725_s27, 1 }
   0x5   : > { %p247_p2 = scmp.lt.s32.totalorder %s725_s27, 5 }
   0x6   : > { %s849_s5 = smov (%p27_p0, %s26_s5), 0  ;;  %s851_s28 = smov (!%p27_p0, %s29_s28), %s721_s26 }
   0x7   : > { %p248_p3 = pnand %p610_p1, %p247_p2  ;;  %p31_p4 = scmp.ge.s32.totalorder %s851_s28, 2 }
   0x8   : > { %p291_p5 = scmp.lt.s32.totalorder (!%p248_p3), %s713_s24, 1  ;;  %p293_p6 = scmp.lt.s32.totalorder (!%p248_p3), %s709_s23, 1 }
   0x9   : > { %s853_s28 = smov (%p31_p4, %s851_s28), 0  ;;  %251 = sbr.rel (%p248_p3) target bundleno = 274 (0x112), region = 44 }
   0xa   : > { %s492_s20 = sld [smem:[#allocation2]] (!%p248_p3) }
   0xe   : > { %v727_v0 = vmov 0.0   ;;  %v473_v1 = vld [vmem:[%s841_s4] sm:$0xff]  ;;  %s855_s24 = smov (!%p291_p5, %s713_s24), 1  ;;  %vm728_vm0 = vmmov 0   ;;  %s857_s23 = smov (!%p293_p6, %s709_s23), 1  ;;  %v729_v2 = vmov 1  }
   0xf   : > { %627 = vmatprep.subr.mxu0 %v727_v0  ;;  %632 = vmatprep.subr.mxu1 %v727_v0  ;;  %s611_s7 = sshll.u32 %s855_s24, 1  ;;  %vm323_vm1 = vcmask 1043456   ;;  %v318_v3 = vld [vmem:[%s840_s3] sm:$0xff]  ;;  %vm319_vm2 = vcmask 31744   ;;  %v730_v6 = vmov 0  }
  0x10   : > { %629 = vmatprep.mubr.msk.f32.mxu0 %vm728_vm0, %v727_v0  ;;  %634 = vmatprep.mubr.msk.f32.mxu1 %vm728_vm0, %v727_v0  ;;  %s296_s8 = sadd.s32 %s611_s7, %s857_s23  ;;  %v316_v5 = vld [vmem:[%s839_s2] sm:$0xff]  ;;  %v493_v23 = vstv %s492_s20 }
  0x11   : > { %681 = vset.pattern.permute.xlu0 %v729_v2  ;;  %s802_s9 = sshll.u32 %s296_s8, 2 }
  0x12   : > { %476 = vperm.xlu0 %681, %v473_v1   ;;  %s306_s12 = scalar_lea.vmem %s838_s1, %s802_s9  ;;  %s298_s17 = scalar_lea.vmem %s837_s0, %s802_s9 }
  0x13   : > { %v315_v4 = vld [vmem:[%s306_s12] sm:$0xf]  ;;  %s314_s23 = scalar_lea.vmem %s843_s6, %s802_s9 }
  0x14   : > { %628 = vmatpush3.msk.msra.mxu0 %vm323_vm1, %v315_v4  ;;  %v317_v7 = vld [vmem:[%s298_s17] sm:$0xf] }
  0x15   : > { %633 = vmatpush3.msk.msra.mxu1 %vm323_vm1, %v317_v7  ;;  %630 = vmatmul.mubr.msk.f32.vlgmr.msra.gmra.mxu0 %vm319_vm2, %v318_v3 }
  0x16   : > { %682 = vset.pattern.permute.xlu0 %v730_v6  ;;  %635 = vmatmul.mubr.msk.f32.vlgmr.msra.gmra.mxu1 %vm319_vm2, %v316_v5 }
  0x17   : > { %482 = vperm.xlu0 %682, %v473_v1  }
  0x8d   : > { %v477_v8 = vpop.permute.xlu0 %476 }
  0x92   : > { %v483_v15 = vpop.permute.xlu0 %482 }
  0xd5   : > { %v393_v9 = vpop.f32.mrf.mxu0 }
  0xd6   : > { %v469_v10 = vpop.f32.mrf.mxu1 }
  0xd7   : > { %v470_v11 = vadd.f32 %v469_v10, %v393_v9  ;;  %v631_v12 = vpop.f32.mrf.mxu0 }
  0xd8   : > { %v636_v13 = vpop.f32.mrf.mxu1 }
  0xd9   : > { %v479_v14 = vadd.f32 %v477_v8, %v470_v11 }
  0xdb   : > { %v480_v16 = vmax.f32 %v479_v14, 0.0 }
  0xdd   : > { %v485_v17 = vmul.f32 %v483_v15, %v480_v16 }
  0xdf   : > { %v486_v18 = vrot.slane %v485_v17, 4 }
  0xe1   : > { %v487_v19 = vadd.f32 %v486_v18, %v485_v17 }
  0xe3   : > { %v488_v20 = vrot.slane %v487_v19, 2 }
  0xe5   : > { %v489_v21 = vadd.f32 %v488_v20, %v487_v19 }
  0xe7   : > { %v490_v22 = vrot.slane %v489_v21, 1 }
  0xe9   : > { %v491_v24 = vadd.f32 %v490_v22, %v489_v21 }
  0xeb   : > { %v494_v25 = vadd.f32 %v493_v23, %v491_v24 }
  0xed   : > { %v495_v26 = vsub.f32 0.0, %v494_v25 }
  0xef   : > { %v496_v27 = vmul.f32 1.442695, %v495_v26 }
  0xf1   : > { %683 = vpow2.f32 %v496_v27 }
  0xfe   : > { %v684_v28 = vpop.eup %683 }
  0xff   : > { %v498_v29 = vadd.f32 1.0, %v684_v28 }
 0x101   : > { %685 = vrcp.f32 %v498_v29 }
 0x10e   : > { %v686_v30 = vpop.eup %685 }
 0x10f   : > { %v500_v31 = vmul.f32 %v686_v30, %v315_v4 }
 0x111   : > { %501 = vst [vmem:[%s314_s23] sm:$0xf] %v500_v31 }
 0x112 PF: > { %s17_s27 = sadd.s32 1, %s725_s27   ;;  %s844_s23 = smov %s717_s25 }
 0x113   : > { %p14_p7 = scmp.ge.s32.totalorder %s17_s27, 6   ;;  %s845_s24 = smov %s721_s26 }
 0x114   : > { %s846_s25 = smov %s849_s5  ;;  %s847_s26 = smov %s853_s28 }
 0x115   :  { %16 = sbr.rel (!%p14_p7) target bundleno = 3 (0x3), region = 77 }

</bundles_post_ra>
